<compile_context>
chip_gen: v7x
topology: tpu7x:2x2x1
jax: 0.10.0
libtpu: 0.0.40
codegen_flags: <defaults>
</compile_context>

<pallas_src>
import functools

import jax
import jax.numpy as jnp
import numpy as np
from jax.experimental import pallas as pl
from jax.experimental.pallas import tpu as pltpu


def card_embedding_kernel(x_ref, table_ref, o_ref):
    x = x_ref[...]                                   # (Bt, P*C) int32
    Bt, PC = x.shape
    P = table_ref.shape[0] // 128                    # row-packing factor
    C = PC // P                                      # cards per original row

    valid = x >= 0
    xc = jnp.maximum(x, 0)                           # clamp(min=0)
    neg = jnp.int32(-1)                              # never matches iota in [0,128)
    card_t = jnp.where(valid, xc, neg)               # (Bt, P*C) narrow -> cheap
    rank_t = jnp.where(valid, 52 + (xc >> 2), neg)
    suit_t = jnp.where(valid, 65 + (xc & 3), neg)

    iota = jax.lax.broadcasted_iota(jnp.int32, (Bt, 128), 1)
    blocks = [jnp.zeros((Bt, 128), jnp.float32) for _ in range(P)]
    for j in range(PC):                              # small & static -> unrolled
        p = j // C                                   # which packed sub-row
        hit = ((iota == card_t[:, j:j + 1]) |
               (iota == rank_t[:, j:j + 1]) |
               (iota == suit_t[:, j:j + 1]))         # 3 disjoint target ranges
        blocks[p] = blocks[p] + hit.astype(jnp.float32)

    counts = blocks[0] if P == 1 else jnp.concatenate(blocks, axis=-1)
    o_ref[...] = jnp.dot(counts, table_ref[...],
                         preferred_element_type=jnp.float32).astype(o_ref.dtype)


def _round_up(x, m):
    return (x + m - 1) // m * m


def _build_fused_table(card_w, rank_w, suit_w, pack):
    dim = card_w.shape[1]
    t = jnp.zeros((128, dim), jnp.float32)
    t = t.at[0:52, :].set(card_w.astype(jnp.float32))
    t = t.at[52:65, :].set(rank_w.astype(jnp.float32))
    t = t.at[65:69, :].set(suit_w.astype(jnp.float32))
    if pack == 1:
        return t
    # Block-diagonal replication so one matmul yields the row-packed,
    # lane-dense (Bt, pack*dim) output block.
    tp = jnp.zeros((pack * 128, pack * dim), jnp.float32)
    for p in range(pack):
        tp = tp.at[p * 128:(p + 1) * 128, p * dim:(p + 1) * dim].set(t)
    return tp


@functools.partial(jax.jit, static_argnames=("packed_batch_tile",))
def card_embedding(x, card_w, rank_w, suit_w, *, packed_batch_tile=1024):
    B, C = x.shape
    dim = card_w.shape[1]
    x = x.astype(jnp.int32)

    # Row-packing factor: pack P batch rows per 128-lane output row when the
    # embedding dim is a sub-multiple of 128 (keeps output stores unmasked).
    P = 128 // dim if (dim < 128 and 128 % dim == 0) else 1

    table = _build_fused_table(card_w, rank_w, suit_w, P)   # (P*128, P*dim)

    # Batch tiling (in packed rows).  Adaptive for small B; large tiles for
    # big B keep us near the HBM roofline.  Working set stays a few MiB, well
    # under the scoped-VMEM default on v5e/v6e/v7x.
    packed_rows = -(-B // P)
    tile = min(packed_batch_tile, _round_up(packed_rows, 8))
    tile = _round_up(tile, 8)
    grid_n = -(-packed_rows // tile)
    B_pad = grid_n * tile * P

    if B_pad != B:
        x = jnp.pad(x, ((0, B_pad - B), (0, 0)), constant_values=-1)
    x_packed = x.reshape(B_pad // P, P * C)          # free metadata reshape

    out_packed = pl.pallas_call(
        card_embedding_kernel,
        out_shape=jax.ShapeDtypeStruct((B_pad // P, P * dim), jnp.float32),
        grid=(grid_n,),
        in_specs=[
            pl.BlockSpec((tile, P * C), lambda i: (i, 0)),
            pl.BlockSpec((P * 128, P * dim), lambda i: (0, 0)),  # table resident
        ],
        out_specs=pl.BlockSpec((tile, P * dim), lambda i: (i, 0)),
        compiler_params=pltpu.CompilerParams(
            dimension_semantics=("parallel",)),
    )(x_packed, table)

    return out_packed.reshape(B_pad, dim)[:B]        # free reshape + slice


def card_embedding_ref(x, card_w, rank_w, suit_w):
    # Pure-JAX reference mirroring the PyTorch forward exactly.
    B, C = x.shape
    xf = x.reshape(-1)
    valid = (xf >= 0).astype(jnp.float32)
    xc = jnp.maximum(xf, 0)
    embs = card_w[xc] + rank_w[xc // 4] + suit_w[xc % 4]
    embs = embs * valid[:, None]
    return embs.reshape(B, C, -1).sum(1)


if __name__ == "__main__":
    num_cards, dim = 7, 64   # hold'em: 2 hole + 5 board cards

    key = jax.random.PRNGKey(0)
    k_card, k_rank, k_suit, k_x1, k_x2 = jax.random.split(key, 5)

    # nn.Embedding default init: N(0, 1)
    card_w = jax.random.normal(k_card, (52, dim), dtype=jnp.float32)
    rank_w = jax.random.normal(k_rank, (13, dim), dtype=jnp.float32)
    suit_w = jax.random.normal(k_suit, (4, dim), dtype=jnp.float32)

    # Small check (single grid step, padded batch).
    x1 = jax.random.randint(k_x1, (4, num_cards), -1, 52, dtype=jnp.int32)
    out1 = jax.block_until_ready(card_embedding(x1, card_w, rank_w, suit_w))
    ref1 = card_embedding_ref(x1, card_w, rank_w, suit_w)
    np.testing.assert_allclose(np.asarray(out1), np.asarray(ref1),
                               rtol=1e-5, atol=1e-5)

    # Second check exercising the multi-step grid + trailing-tile padding.
    x2 = jax.random.randint(k_x2, (40, num_cards), -1, 52, dtype=jnp.int32)
    out2 = jax.block_until_ready(
        card_embedding(x2, card_w, rank_w, suit_w, packed_batch_tile=8))
    ref2 = card_embedding_ref(x2, card_w, rank_w, suit_w)
    np.testing.assert_allclose(np.asarray(out2), np.asarray(ref2),
                               rtol=1e-5, atol=1e-5)

    print("KERNEL_OK")
</pallas_src>

<mosaic_0001>
module attributes {stable_mosaic.version = 11 : i64} {
  func.func @card_embedding_kernel(%arg0: i32, %arg1: memref<8x14xi32, #tpu.memory_space<vmem>>, %arg2: memref<256x128xf32, #tpu.memory_space<vmem>>, %arg3: memref<8x128xf32, #tpu.memory_space<vmem>>) attributes {dimension_semantics = [#tpu.dimension_semantics<parallel>], iteration_bounds = array<i64: 1>, scalar_prefetch = 0 : i64, scratch_operands = 0 : i64, tpu.core_type = #tpu.core_type<tc>, window_params = [{transform_indices = @transform_0, window_bounds = array<i64: 8, 14>}, {pipeline_mode = #tpu.pipeline_mode<synchronous>, transform_indices = @transform_1, window_bounds = array<i64: 256, 128>}, {transform_indices = @transform_2, window_bounds = array<i64: 8, 128>}]} {
    %c0 = arith.constant 0 : index
    %c0_0 = arith.constant 0 : index
    %0 = vector.load %arg1[%c0, %c0_0] : memref<8x14xi32, #tpu.memory_space<vmem>>, vector<8x14xi32>
    %c0_i32 = arith.constant 0 : i32
    %1 = vector.broadcast %c0_i32 : i32 to vector<8x14xi32>
    %2 = arith.cmpi sge, %0, %1 : vector<8x14xi32>
    %c0_i32_1 = arith.constant 0 : i32
    %3 = vector.broadcast %c0_i32_1 : i32 to vector<8x14xi32>
    %4 = arith.maxsi %0, %3 : vector<8x14xi32>
    %c-1_i32 = arith.constant -1 : i32
    %5 = vector.broadcast %c-1_i32 : i32 to vector<8x14xi32>
    %6 = arith.select %2, %4, %5 : vector<8x14xi1>, vector<8x14xi32>
    %c2_i32 = arith.constant 2 : i32
    %7 = vector.broadcast %c2_i32 : i32 to vector<8x14xi32>
    %8 = arith.shrsi %4, %7 : vector<8x14xi32>
    %c52_i32 = arith.constant 52 : i32
    %9 = vector.broadcast %c52_i32 : i32 to vector<8x14xi32>
    %10 = arith.addi %9, %8 : vector<8x14xi32>
    %c-1_i32_2 = arith.constant -1 : i32
    %11 = vector.broadcast %c-1_i32_2 : i32 to vector<8x14xi32>
    %12 = arith.select %2, %10, %11 : vector<8x14xi1>, vector<8x14xi32>
    %c3_i32 = arith.constant 3 : i32
    %13 = vector.broadcast %c3_i32 : i32 to vector<8x14xi32>
    %14 = arith.andi %4, %13 : vector<8x14xi32>
    %c65_i32 = arith.constant 65 : i32
    %15 = vector.broadcast %c65_i32 : i32 to vector<8x14xi32>
    %16 = arith.addi %15, %14 : vector<8x14xi32>
    %c-1_i32_3 = arith.constant -1 : i32
    %17 = vector.broadcast %c-1_i32_3 : i32 to vector<8x14xi32>
    %18 = arith.select %2, %16, %17 : vector<8x14xi1>, vector<8x14xi32>
    %19 = tpu.iota {dimensions = array<i32: 1>} : vector<8x128xi32>
    %cst = arith.constant 0.000000e+00 : f32
    %20 = vector.broadcast %cst : f32 to vector<8x128xf32>
    %cst_4 = arith.constant 0.000000e+00 : f32
    %21 = vector.broadcast %cst_4 : f32 to vector<8x128xf32>
    %22 = vector.extract_strided_slice %6 {offsets = [0, 0], sizes = [8, 1], strides = [1, 1]} : vector<8x14xi32> to vector<8x1xi32>
    %23 = vector.broadcast %22 : vector<8x1xi32> to vector<8x128xi32>
    %24 = arith.cmpi eq, %19, %23 : vector<8x128xi32>
    %25 = vector.extract_strided_slice %12 {offsets = [0, 0], sizes = [8, 1], strides = [1, 1]} : vector<8x14xi32> to vector<8x1xi32>
    %26 = vector.broadcast %25 : vector<8x1xi32> to vector<8x128xi32>
    %27 = arith.cmpi eq, %19, %26 : vector<8x128xi32>
    %28 = arith.ori %24, %27 : vector<8x128xi1>
    %29 = vector.extract_strided_slice %18 {offsets = [0, 0], sizes = [8, 1], strides = [1, 1]} : vector<8x14xi32> to vector<8x1xi32>
    %30 = vector.broadcast %29 : vector<8x1xi32> to vector<8x128xi32>
    %31 = arith.cmpi eq, %19, %30 : vector<8x128xi32>
    %32 = arith.ori %28, %31 : vector<8x128xi1>
    %33 = arith.extui %32 : vector<8x128xi1> to vector<8x128xi32>
    %34 = arith.sitofp %33 : vector<8x128xi32> to vector<8x128xf32>
    %35 = arith.addf %20, %34 : vector<8x128xf32>
    %36 = vector.extract_strided_slice %6 {offsets = [0, 1], sizes = [8, 1], strides = [1, 1]} : vector<8x14xi32> to vector<8x1xi32>
    %37 = vector.broadcast %36 : vector<8x1xi32> to vector<8x128xi32>
    %38 = arith.cmpi eq, %19, %37 : vector<8x128xi32>
    %39 = vector.extract_strided_slice %12 {offsets = [0, 1], sizes = [8, 1], strides = [1, 1]} : vector<8x14xi32> to vector<8x1xi32>
    %40 = vector.broadcast %39 : vector<8x1xi32> to vector<8x128xi32>
    %41 = arith.cmpi eq, %19, %40 : vector<8x128xi32>
    %42 = arith.ori %38, %41 : vector<8x128xi1>
    %43 = vector.extract_strided_slice %18 {offsets = [0, 1], sizes = [8, 1], strides = [1, 1]} : vector<8x14xi32> to vector<8x1xi32>
    %44 = vector.broadcast %43 : vector<8x1xi32> to vector<8x128xi32>
    %45 = arith.cmpi eq, %19, %44 : vector<8x128xi32>
    %46 = arith.ori %42, %45 : vector<8x128xi1>
    %47 = arith.extui %46 : vector<8x128xi1> to vector<8x128xi32>
    %48 = arith.sitofp %47 : vector<8x128xi32> to vector<8x128xf32>
    %49 = arith.addf %35, %48 : vector<8x128xf32>
    %50 = vector.extract_strided_slice %6 {offsets = [0, 2], sizes = [8, 1], strides = [1, 1]} : vector<8x14xi32> to vector<8x1xi32>
    %51 = vector.broadcast %50 : vector<8x1xi32> to vector<8x128xi32>
    %52 = arith.cmpi eq, %19, %51 : vector<8x128xi32>
    %53 = vector.extract_strided_slice %12 {offsets = [0, 2], sizes = [8, 1], strides = [1, 1]} : vector<8x14xi32> to vector<8x1xi32>
    %54 = vector.broadcast %53 : vector<8x1xi32> to vector<8x128xi32>
    %55 = arith.cmpi eq, %19, %54 : vector<8x128xi32>
    %56 = arith.ori %52, %55 : vector<8x128xi1>
    %57 = vector.extract_strided_slice %18 {offsets = [0, 2], sizes = [8, 1], strides = [1, 1]} : vector<8x14xi32> to vector<8x1xi32>
    %58 = vector.broadcast %57 : vector<8x1xi32> to vector<8x128xi32>
    %59 = arith.cmpi eq, %19, %58 : vector<8x128xi32>
    %60 = arith.ori %56, %59 : vector<8x128xi1>
    %61 = arith.extui %60 : vector<8x128xi1> to vector<8x128xi32>
    %62 = arith.sitofp %61 : vector<8x128xi32> to vector<8x128xf32>
    %63 = arith.addf %49, %62 : vector<8x128xf32>
    %64 = vector.extract_strided_slice %6 {offsets = [0, 3], sizes = [8, 1], strides = [1, 1]} : vector<8x14xi32> to vector<8x1xi32>
    %65 = vector.broadcast %64 : vector<8x1xi32> to vector<8x128xi32>
    %66 = arith.cmpi eq, %19, %65 : vector<8x128xi32>
    %67 = vector.extract_strided_slice %12 {offsets = [0, 3], sizes = [8, 1], strides = [1, 1]} : vector<8x14xi32> to vector<8x1xi32>
    %68 = vector.broadcast %67 : vector<8x1xi32> to vector<8x128xi32>
    %69 = arith.cmpi eq, %19, %68 : vector<8x128xi32>
    %70 = arith.ori %66, %69 : vector<8x128xi1>
    %71 = vector.extract_strided_slice %18 {offsets = [0, 3], sizes = [8, 1], strides = [1, 1]} : vector<8x14xi32> to vector<8x1xi32>
    %72 = vector.broadcast %71 : vector<8x1xi32> to vector<8x128xi32>
    %73 = arith.cmpi eq, %19, %72 : vector<8x128xi32>
    %74 = arith.ori %70, %73 : vector<8x128xi1>
    %75 = arith.extui %74 : vector<8x128xi1> to vector<8x128xi32>
    %76 = arith.sitofp %75 : vector<8x128xi32> to vector<8x128xf32>
    %77 = arith.addf %63, %76 : vector<8x128xf32>
    %78 = vector.extract_strided_slice %6 {offsets = [0, 4], sizes = [8, 1], strides = [1, 1]} : vector<8x14xi32> to vector<8x1xi32>
    %79 = vector.broadcast %78 : vector<8x1xi32> to vector<8x128xi32>
    %80 = arith.cmpi eq, %19, %79 : vector<8x128xi32>
    %81 = vector.extract_strided_slice %12 {offsets = [0, 4], sizes = [8, 1], strides = [1, 1]} : vector<8x14xi32> to vector<8x1xi32>
    %82 = vector.broadcast %81 : vector<8x1xi32> to vector<8x128xi32>
    %83 = arith.cmpi eq, %19, %82 : vector<8x128xi32>
    %84 = arith.ori %80, %83 : vector<8x128xi1>
    %85 = vector.extract_strided_slice %18 {offsets = [0, 4], sizes = [8, 1], strides = [1, 1]} : vector<8x14xi32> to vector<8x1xi32>
    %86 = vector.broadcast %85 : vector<8x1xi32> to vector<8x128xi32>
    %87 = arith.cmpi eq, %19, %86 : vector<8x128xi32>
    %88 = arith.ori %84, %87 : vector<8x128xi1>
    %89 = arith.extui %88 : vector<8x128xi1> to vector<8x128xi32>
    %90 = arith.sitofp %89 : vector<8x128xi32> to vector<8x128xf32>
    %91 = arith.addf %77, %90 : vector<8x128xf32>
    %92 = vector.extract_strided_slice %6 {offsets = [0, 5], sizes = [8, 1], strides = [1, 1]} : vector<8x14xi32> to vector<8x1xi32>
    %93 = vector.broadcast %92 : vector<8x1xi32> to vector<8x128xi32>
    %94 = arith.cmpi eq, %19, %93 : vector<8x128xi32>
    %95 = vector.extract_strided_slice %12 {offsets = [0, 5], sizes = [8, 1], strides = [1, 1]} : vector<8x14xi32> to vector<8x1xi32>
    %96 = vector.broadcast %95 : vector<8x1xi32> to vector<8x128xi32>
    %97 = arith.cmpi eq, %19, %96 : vector<8x128xi32>
    %98 = arith.ori %94, %97 : vector<8x128xi1>
    %99 = vector.extract_strided_slice %18 {offsets = [0, 5], sizes = [8, 1], strides = [1, 1]} : vector<8x14xi32> to vector<8x1xi32>
    %100 = vector.broadcast %99 : vector<8x1xi32> to vector<8x128xi32>
    %101 = arith.cmpi eq, %19, %100 : vector<8x128xi32>
    %102 = arith.ori %98, %101 : vector<8x128xi1>
    %103 = arith.extui %102 : vector<8x128xi1> to vector<8x128xi32>
    %104 = arith.sitofp %103 : vector<8x128xi32> to vector<8x128xf32>
    %105 = arith.addf %91, %104 : vector<8x128xf32>
    %106 = vector.extract_strided_slice %6 {offsets = [0, 6], sizes = [8, 1], strides = [1, 1]} : vector<8x14xi32> to vector<8x1xi32>
    %107 = vector.broadcast %106 : vector<8x1xi32> to vector<8x128xi32>
    %108 = arith.cmpi eq, %19, %107 : vector<8x128xi32>
    %109 = vector.extract_strided_slice %12 {offsets = [0, 6], sizes = [8, 1], strides = [1, 1]} : vector<8x14xi32> to vector<8x1xi32>
    %110 = vector.broadcast %109 : vector<8x1xi32> to vector<8x128xi32>
    %111 = arith.cmpi eq, %19, %110 : vector<8x128xi32>
    %112 = arith.ori %108, %111 : vector<8x128xi1>
    %113 = vector.extract_strided_slice %18 {offsets = [0, 6], sizes = [8, 1], strides = [1, 1]} : vector<8x14xi32> to vector<8x1xi32>
    %114 = vector.broadcast %113 : vector<8x1xi32> to vector<8x128xi32>
    %115 = arith.cmpi eq, %19, %114 : vector<8x128xi32>
    %116 = arith.ori %112, %115 : vector<8x128xi1>
    %117 = arith.extui %116 : vector<8x128xi1> to vector<8x128xi32>
    %118 = arith.sitofp %117 : vector<8x128xi32> to vector<8x128xf32>
    %119 = arith.addf %105, %118 : vector<8x128xf32>
    %120 = vector.extract_strided_slice %6 {offsets = [0, 7], sizes = [8, 1], strides = [1, 1]} : vector<8x14xi32> to vector<8x1xi32>
    %121 = vector.broadcast %120 : vector<8x1xi32> to vector<8x128xi32>
    %122 = arith.cmpi eq, %19, %121 : vector<8x128xi32>
    %123 = vector.extract_strided_slice %12 {offsets = [0, 7], sizes = [8, 1], strides = [1, 1]} : vector<8x14xi32> to vector<8x1xi32>
    %124 = vector.broadcast %123 : vector<8x1xi32> to vector<8x128xi32>
    %125 = arith.cmpi eq, %19, %124 : vector<8x128xi32>
    %126 = arith.ori %122, %125 : vector<8x128xi1>
    %127 = vector.extract_strided_slice %18 {offsets = [0, 7], sizes = [8, 1], strides = [1, 1]} : vector<8x14xi32> to vector<8x1xi32>
    %128 = vector.broadcast %127 : vector<8x1xi32> to vector<8x128xi32>
    %129 = arith.cmpi eq, %19, %128 : vector<8x128xi32>
    %130 = arith.ori %126, %129 : vector<8x128xi1>
    %131 = arith.extui %130 : vector<8x128xi1> to vector<8x128xi32>
    %132 = arith.sitofp %131 : vector<8x128xi32> to vector<8x128xf32>
    %133 = arith.addf %21, %132 : vector<8x128xf32>
    %134 = vector.extract_strided_slice %6 {offsets = [0, 8], sizes = [8, 1], strides = [1, 1]} : vector<8x14xi32> to vector<8x1xi32>
    %135 = vector.broadcast %134 : vector<8x1xi32> to vector<8x128xi32>
    %136 = arith.cmpi eq, %19, %135 : vector<8x128xi32>
    %137 = vector.extract_strided_slice %12 {offsets = [0, 8], sizes = [8, 1], strides = [1, 1]} : vector<8x14xi32> to vector<8x1xi32>
    %138 = vector.broadcast %137 : vector<8x1xi32> to vector<8x128xi32>
    %139 = arith.cmpi eq, %19, %138 : vector<8x128xi32>
    %140 = arith.ori %136, %139 : vector<8x128xi1>
    %141 = vector.extract_strided_slice %18 {offsets = [0, 8], sizes = [8, 1], strides = [1, 1]} : vector<8x14xi32> to vector<8x1xi32>
    %142 = vector.broadcast %141 : vector<8x1xi32> to vector<8x128xi32>
    %143 = arith.cmpi eq, %19, %142 : vector<8x128xi32>
    %144 = arith.ori %140, %143 : vector<8x128xi1>
    %145 = arith.extui %144 : vector<8x128xi1> to vector<8x128xi32>
    %146 = arith.sitofp %145 : vector<8x128xi32> to vector<8x128xf32>
    %147 = arith.addf %133, %146 : vector<8x128xf32>
    %148 = vector.extract_strided_slice %6 {offsets = [0, 9], sizes = [8, 1], strides = [1, 1]} : vector<8x14xi32> to vector<8x1xi32>
    %149 = vector.broadcast %148 : vector<8x1xi32> to vector<8x128xi32>
    %150 = arith.cmpi eq, %19, %149 : vector<8x128xi32>
    %151 = vector.extract_strided_slice %12 {offsets = [0, 9], sizes = [8, 1], strides = [1, 1]} : vector<8x14xi32> to vector<8x1xi32>
    %152 = vector.broadcast %151 : vector<8x1xi32> to vector<8x128xi32>
    %153 = arith.cmpi eq, %19, %152 : vector<8x128xi32>
    %154 = arith.ori %150, %153 : vector<8x128xi1>
    %155 = vector.extract_strided_slice %18 {offsets = [0, 9], sizes = [8, 1], strides = [1, 1]} : vector<8x14xi32> to vector<8x1xi32>
    %156 = vector.broadcast %155 : vector<8x1xi32> to vector<8x128xi32>
    %157 = arith.cmpi eq, %19, %156 : vector<8x128xi32>
    %158 = arith.ori %154, %157 : vector<8x128xi1>
    %159 = arith.extui %158 : vector<8x128xi1> to vector<8x128xi32>
    %160 = arith.sitofp %159 : vector<8x128xi32> to vector<8x128xf32>
    %161 = arith.addf %147, %160 : vector<8x128xf32>
    %162 = vector.extract_strided_slice %6 {offsets = [0, 10], sizes = [8, 1], strides = [1, 1]} : vector<8x14xi32> to vector<8x1xi32>
    %163 = vector.broadcast %162 : vector<8x1xi32> to vector<8x128xi32>
    %164 = arith.cmpi eq, %19, %163 : vector<8x128xi32>
    %165 = vector.extract_strided_slice %12 {offsets = [0, 10], sizes = [8, 1], strides = [1, 1]} : vector<8x14xi32> to vector<8x1xi32>
    %166 = vector.broadcast %165 : vector<8x1xi32> to vector<8x128xi32>
    %167 = arith.cmpi eq, %19, %166 : vector<8x128xi32>
    %168 = arith.ori %164, %167 : vector<8x128xi1>
    %169 = vector.extract_strided_slice %18 {offsets = [0, 10], sizes = [8, 1], strides = [1, 1]} : vector<8x14xi32> to vector<8x1xi32>
    %170 = vector.broadcast %169 : vector<8x1xi32> to vector<8x128xi32>
    %171 = arith.cmpi eq, %19, %170 : vector<8x128xi32>
    %172 = arith.ori %168, %171 : vector<8x128xi1>
    %173 = arith.extui %172 : vector<8x128xi1> to vector<8x128xi32>
    %174 = arith.sitofp %173 : vector<8x128xi32> to vector<8x128xf32>
    %175 = arith.addf %161, %174 : vector<8x128xf32>
    %176 = vector.extract_strided_slice %6 {offsets = [0, 11], sizes = [8, 1], strides = [1, 1]} : vector<8x14xi32> to vector<8x1xi32>
    %177 = vector.broadcast %176 : vector<8x1xi32> to vector<8x128xi32>
    %178 = arith.cmpi eq, %19, %177 : vector<8x128xi32>
    %179 = vector.extract_strided_slice %12 {offsets = [0, 11], sizes = [8, 1], strides = [1, 1]} : vector<8x14xi32> to vector<8x1xi32>
    %180 = vector.broadcast %179 : vector<8x1xi32> to vector<8x128xi32>
    %181 = arith.cmpi eq, %19, %180 : vector<8x128xi32>
    %182 = arith.ori %178, %181 : vector<8x128xi1>
    %183 = vector.extract_strided_slice %18 {offsets = [0, 11], sizes = [8, 1], strides = [1, 1]} : vector<8x14xi32> to vector<8x1xi32>
    %184 = vector.broadcast %183 : vector<8x1xi32> to vector<8x128xi32>
    %185 = arith.cmpi eq, %19, %184 : vector<8x128xi32>
    %186 = arith.ori %182, %185 : vector<8x128xi1>
    %187 = arith.extui %186 : vector<8x128xi1> to vector<8x128xi32>
    %188 = arith.sitofp %187 : vector<8x128xi32> to vector<8x128xf32>
    %189 = arith.addf %175, %188 : vector<8x128xf32>
    %190 = vector.extract_strided_slice %6 {offsets = [0, 12], sizes = [8, 1], strides = [1, 1]} : vector<8x14xi32> to vector<8x1xi32>
    %191 = vector.broadcast %190 : vector<8x1xi32> to vector<8x128xi32>
    %192 = arith.cmpi eq, %19, %191 : vector<8x128xi32>
    %193 = vector.extract_strided_slice %12 {offsets = [0, 12], sizes = [8, 1], strides = [1, 1]} : vector<8x14xi32> to vector<8x1xi32>
    %194 = vector.broadcast %193 : vector<8x1xi32> to vector<8x128xi32>
    %195 = arith.cmpi eq, %19, %194 : vector<8x128xi32>
    %196 = arith.ori %192, %195 : vector<8x128xi1>
    %197 = vector.extract_strided_slice %18 {offsets = [0, 12], sizes = [8, 1], strides = [1, 1]} : vector<8x14xi32> to vector<8x1xi32>
    %198 = vector.broadcast %197 : vector<8x1xi32> to vector<8x128xi32>
    %199 = arith.cmpi eq, %19, %198 : vector<8x128xi32>
    %200 = arith.ori %196, %199 : vector<8x128xi1>
    %201 = arith.extui %200 : vector<8x128xi1> to vector<8x128xi32>
    %202 = arith.sitofp %201 : vector<8x128xi32> to vector<8x128xf32>
    %203 = arith.addf %189, %202 : vector<8x128xf32>
    %204 = vector.extract_strided_slice %6 {offsets = [0, 13], sizes = [8, 1], strides = [1, 1]} : vector<8x14xi32> to vector<8x1xi32>
    %205 = vector.broadcast %204 : vector<8x1xi32> to vector<8x128xi32>
    %206 = arith.cmpi eq, %19, %205 : vector<8x128xi32>
    %207 = vector.extract_strided_slice %12 {offsets = [0, 13], sizes = [8, 1], strides = [1, 1]} : vector<8x14xi32> to vector<8x1xi32>
    %208 = vector.broadcast %207 : vector<8x1xi32> to vector<8x128xi32>
    %209 = arith.cmpi eq, %19, %208 : vector<8x128xi32>
    %210 = arith.ori %206, %209 : vector<8x128xi1>
    %211 = vector.extract_strided_slice %18 {offsets = [0, 13], sizes = [8, 1], strides = [1, 1]} : vector<8x14xi32> to vector<8x1xi32>
    %212 = vector.broadcast %211 : vector<8x1xi32> to vector<8x128xi32>
    %213 = arith.cmpi eq, %19, %212 : vector<8x128xi32>
    %214 = arith.ori %210, %213 : vector<8x128xi1>
    %215 = arith.extui %214 : vector<8x128xi1> to vector<8x128xi32>
    %216 = arith.sitofp %215 : vector<8x128xi32> to vector<8x128xf32>
    %217 = arith.addf %203, %216 : vector<8x128xf32>
    %218 = tpu.concatenate %119, %217 in 1 : vector<8x128xf32>, vector<8x128xf32> -> vector<8x256xf32>
    %c0_5 = arith.constant 0 : index
    %c0_6 = arith.constant 0 : index
    %219 = vector.load %arg2[%c0_5, %c0_6] : memref<256x128xf32, #tpu.memory_space<vmem>>, vector<256x128xf32>
    %cst_7 = arith.constant dense<0.000000e+00> : vector<8x128xf32>
    %220 = tpu.matmul %218, %219, %cst_7 {dimension_numbers = #tpu.dot_dimension_numbers<[1], [0], [0], [1], [0, 0, 1, 1], [], []>} : vector<8x256xf32>, vector<256x128xf32>, vector<8x128xf32> -> vector<8x128xf32>
    %c0_8 = arith.constant 0 : index
    %c0_9 = arith.constant 0 : index
    %221 = vector.load %arg3[%c0_8, %c0_9] : memref<8x128xf32, #tpu.memory_space<vmem>>, vector<8x128xf32>
    tpu.vector_store %arg3[%c0_8, %c0_9], %220 {strides = array<i32>} : memref<8x128xf32, #tpu.memory_space<vmem>>, vector<8x128xf32>,
    return
  }
  func.func @transform_0(%arg0: i32) -> (i32, i32) {
    %c0_i32 = arith.constant 0 : i32
    %c0_i32_0 = arith.constant 0 : i32
    return %arg0, %c0_i32 : i32, i32
  }
  func.func @transform_1(%arg0: i32) -> (i32, i32) {
    %c0_i32 = arith.constant 0 : i32
    %c0_i32_0 = arith.constant 0 : i32
    %c0_i32_1 = arith.constant 0 : i32
    return %c0_i32, %c0_i32_0 : i32, i32
  }
  func.func @transform_2(%arg0: i32) -> (i32, i32) {
    %c0_i32 = arith.constant 0 : i32
    %c0_i32_0 = arith.constant 0 : i32
    return %arg0, %c0_i32 : i32, i32
  }
}

</mosaic_0001>

<bundles_post_ra>
// kernel: card_embedding.1
= control target key start
LH: loop header
LB: loop body
LE: loop exit
PB: predicated region body
PF: predicated region fallthrough
CT: control target
= control target key end

     0   :  { %v502_v0 = vmov 8   ;;  %v503_v1 = vmov 7   ;;  %v504_v9 = vmov 0   ;;  %v505_v10 = vmov 1   ;;  %s768_s0 = inlined_call_operand.vmem [shape: s32[8,14], index: 0, kind: input, shape index: {}]   ;;  %s769_s1 = inlined_call_operand.vmem [shape: f32[256,128], index: 1, kind: input, shape index: {}]   ;;  %s770_s2 = inlined_call_operand.vmem [shape: f32[8,128], index: 2, kind: output, shape index: {}]  }
   0x1   :  { %466 = vset.pattern.permute.xlu1 %v502_v0  ;;  %465 = vset.pattern.permute.xlu0 %v503_v1  ;;  %v11_v2 = vld [vmem:[%s768_s0] sm:$0xff]  ;;  %v506_v13 = vmov 9   ;;  %v507_v14 = vmov 10   ;;  %v508_v15 = vmov 3   ;;  %v509_v16 = vmov 2   ;;  %v279_v24 = vld [vmem:[%s769_s1 + $0x88] sm:$0xff] }
   0x2   :  { %vm12_vm0 = vcmp.ge.s32.totalorder %v11_v2, 0  ;;  %vm13_vm1 = vcmp.gt.s32.totalorder %v11_v2, 0  ;;  %v510_v17 = vmov 11   ;;  %v511_v18 = vmov 4   ;;  %v278_v23 = vld [vmem:[%s769_s1 + $0x80] sm:$0xff]  ;;  %v263_v27 = vld [vmem:[%s769_s1 + $0x8] sm:$0xff] }
   0x3   :  { %v14_v3 = vsel %vm13_vm1, %v11_v2, 0  ;;  %v512_v19 = vmov 12   ;;  %v513_v20 = vmov 5   ;;  %v514_v21 = vmov 13   ;;  %v262_v25 = vld [vmem:[%s769_s1] sm:$0xff]  ;;  %v280_v29 = vld [vmem:[%s769_s1 + $0x90] sm:$0xff] }
   0x4   :  { %v536_v4 = vsel %vm12_vm0, %v14_v3, 4294967295  ;;  %v16_v5 = vshra.s32 %v14_v3, 2  ;;  %v19_v8 = vand.u32 3, %v14_v3  ;;  %v515_v22 = vmov 6   ;;  %v281_v30 = vld [vmem:[%s769_s1 + $0x98] sm:$0xff]  ;;  %v264_v32 = vld [vmem:[%s769_s1 + $0x10] sm:$0xff] }
   0x5   :  { %161 = vperm.xlu1 %466, %v536_v4   ;;  %144 = vperm.xlu0 %465, %v536_v4   ;;  %v418_v26 = vpack.c.bf16 %v279_v24, %v278_v23  ;;  %v420_v28 = vpack.c.bf16 %v263_v27, %v262_v25  ;;  %v422_v31 = vpack.c.bf16 %v281_v30, %v280_v29  ;;  %v265_v33 = vld [vmem:[%s769_s1 + $0x18] sm:$0xff]  ;;  %v282_v35 = vld [vmem:[%s769_s1 + $0xa0] sm:$0xff]  ;;  %v283_v36 = vld [vmem:[%s769_s1 + $0xa8] sm:$0xff] }
   0x6   :  { %v17_v6 = vadd.s32 52, %v16_v5  ;;  %v20_v11 = vadd.s32 65, %v19_v8  ;;  %v424_v34 = vpack.c.bf16 %v265_v33, %v264_v32  ;;  %v426_v37 = vpack.c.bf16 %v283_v36, %v282_v35  ;;  %v266_v38 = vld [vmem:[%s769_s1 + $0x20] sm:$0xff]  ;;  %v267_v39 = vld [vmem:[%s769_s1 + $0x28] sm:$0xff]  ;;  %v284_v41 = vld [vmem:[%s769_s1 + $0xb0] sm:$0xff] }
   0x7   :  { %419 = vmatprep.subr.bf16.mxu0 %v418_v26  ;;  %v428_v40 = vpack.c.bf16 %v267_v39, %v266_v38  ;;  %v285_v42 = vld [vmem:[%s769_s1 + $0xb8] sm:$0xff]  ;;  %v268_v44 = vld [vmem:[%s769_s1 + $0x30] sm:$0xff]  ;;  %v286_v47 = vld [vmem:[%s769_s1 + $0xc0] sm:$0xff] }
   0x8   :  { %v541_v7 = vsel %vm12_vm0, %v17_v6, 4294967295  ;;  %v550_v12 = vsel %vm12_vm0, %v20_v11, 4294967295  ;;  %421 = vmatpush3.bf16.msra.mxu0 %v420_v28  ;;  %v430_v43 = vpack.c.bf16 %v285_v42, %v284_v41  ;;  %v269_v45 = vld [vmem:[%s769_s1 + $0x38] sm:$0xff]  ;;  %v287_v48 = vld [vmem:[%s769_s1 + $0xc8] sm:$0xff]  ;;  %v270_v50 = vld [vmem:[%s769_s1 + $0x40] sm:$0xff] }
   0x9   :  { %165 = vperm.xlu1 %466, %v541_v7   ;;  %148 = vperm.xlu0 %465, %v541_v7   ;;  %v432_v46 = vpack.c.bf16 %v269_v45, %v268_v44  ;;  %v434_v49 = vpack.c.bf16 %v287_v48, %v286_v47  ;;  %v271_v51 = vld [vmem:[%s769_s1 + $0x48] sm:$0xff]  ;;  %v288_v53 = vld [vmem:[%s769_s1 + $0xd0] sm:$0xff]  ;;  %v289_v54 = vld [vmem:[%s769_s1 + $0xd8] sm:$0xff] }
   0xa   :  { %423 = vmatprep.subr.bf16.mxu0 %v422_v31  ;;  %v436_v52 = vpack.c.bf16 %v271_v51, %v270_v50  ;;  %v272_v55 = vld [vmem:[%s769_s1 + $0x50] sm:$0xff]  ;;  %v438_v56 = vpack.c.bf16 %v289_v54, %v288_v53  ;;  %v273_v57 = vld [vmem:[%s769_s1 + $0x58] sm:$0xff]  ;;  %v290_v59 = vld [vmem:[%s769_s1 + $0xe0] sm:$0xff] }
   0xb   :  { %v440_v58 = vpack.c.bf16 %v273_v57, %v272_v55  ;;  %v291_v60 = vld [vmem:[%s769_s1 + $0xe8] sm:$0xff]  ;;  %v274_v62 = vld [vmem:[%s769_s1 + $0x60] sm:$0xff]  ;;  %v292_v2 = vld [vmem:[%s769_s1 + $0xf0] sm:$0xff] }
   0xc   :  { %425 = vmatpush3.bf16.msra.mxu0 %v424_v34  ;;  %v442_v61 = vpack.c.bf16 %v291_v60, %v290_v59  ;;  %v275_v63 = vld [vmem:[%s769_s1 + $0x68] sm:$0xff]  ;;  %v293_v3 = vld [vmem:[%s769_s1 + $0xf8] sm:$0xff] }
   0xd   :  { %467 = vset.pattern.permute.xlu1 %v504_v9  ;;  %469 = vset.pattern.permute.xlu0 %v505_v10  ;;  %v446_v6 = vpack.c.bf16 %v293_v3, %v292_v2  ;;  %v277_v8 = vld [vmem:[%s769_s1 + $0x78] sm:$0xff] }
   0xe   :  { %29 = vperm.xlu1 %467, %v541_v7   ;;  %46 = vperm.xlu0 %469, %v541_v7  }
   0xf   :  { %427 = vmatprep.subr.bf16.mxu0 %v426_v37 }
  0x10   :  { %429 = vmatpush3.bf16.msra.mxu0 %v428_v40 }
  0x11   :  { %431 = vmatprep.subr.bf16.mxu0 %v430_v43 }
  0x12   :  { %468 = vset.pattern.permute.xlu1 %v505_v10  ;;  %470 = vset.pattern.permute.xlu0 %v504_v9 }
  0x13   :  { %42 = vperm.xlu1 %468, %v536_v4   ;;  %25 = vperm.xlu0 %470, %v536_v4  }
  0x14   :  { %433 = vmatpush3.bf16.msra.mxu0 %v432_v46 }
  0x15   :  { %435 = vmatprep.subr.bf16.mxu0 %v434_v49 }
  0x17   :  { %471 = vset.pattern.permute.xlu1 %v503_v1  ;;  %34 = vperm.xlu0 %470, %v550_v12   ;;  %v444_v1 = vpack.c.bf16 %v275_v63, %v274_v62 }
  0x18   :  { %153 = vperm.xlu1 %471, %v550_v12   ;;  %437 = vmatpush3.bf16.msra.mxu0 %v436_v52 }
  0x19   :  { %439 = vmatprep.subr.bf16.mxu0 %v438_v56  ;;  %v773_v56 = vmov 0 }
  0x1b   :  { %475 = vset.pattern.permute.xlu0 %v506_v13 }
  0x1c   :  { %472 = vset.pattern.permute.xlu1 %v502_v0  ;;  %182 = vperm.xlu0 %475, %v541_v7   ;;  %v22_v0 = vlaneseq }
  0x1d   :  { %170 = vperm.xlu1 %472, %v550_v12   ;;  %441 = vmatpush3.bf16.msra.mxu0 %v440_v58 }
  0x1e   :  { %443 = vmatprep.subr.bf16.mxu0 %v442_v61  ;;  %v689_v9 = vand.u32 127, %v22_v0 }
  0x20   :  { %187 = vperm.xlu0 %475, %v550_v12  }
  0x21   :  { %473 = vset.pattern.permute.xlu1 %v505_v10  ;;  %445 = vmatpush3.bf16.msra.mxu0 %v444_v1 }
  0x22   :  { %51 = vperm.xlu1 %473, %v550_v12   ;;  %447 = vmatprep.subr.bf16.mxu0 %v446_v6 }
  0x24   :  { %477 = vset.pattern.permute.xlu0 %v507_v14 }
  0x25   :  { %195 = vperm.xlu0 %477, %v536_v4  }
  0x26   :  { %474 = vset.pattern.permute.xlu1 %v506_v13 }
  0x27   :  { %178 = vperm.xlu1 %474, %v536_v4  }
  0x29   :  { %480 = vset.pattern.permute.xlu0 %v508_v15 }
  0x2a   :  { %80 = vperm.xlu0 %480, %v541_v7  }
  0x2b   :  { %476 = vset.pattern.permute.xlu1 %v509_v16 }
  0x2c   :  { %59 = vperm.xlu1 %476, %v536_v4  }
  0x2e   :  { %483 = vset.pattern.permute.xlu0 %v510_v17 }
  0x2f   :  { %212 = vperm.xlu0 %483, %v536_v4  }
  0x30   :  { %63 = vperm.xlu1 %476, %v541_v7  }
  0x33   :  { %486 = vset.pattern.permute.xlu0 %v511_v18 }
  0x34   :  { %68 = vperm.xlu1 %476, %v550_v12   ;;  %97 = vperm.xlu0 %486, %v541_v7  }
  0x38   :  { %478 = vset.pattern.permute.xlu1 %v507_v14  ;;  %489 = vset.pattern.permute.xlu0 %v512_v19 }
  0x39   :  { %199 = vperm.xlu1 %478, %v541_v7   ;;  %229 = vperm.xlu0 %489, %v536_v4  }
  0x3d   :  { %479 = vset.pattern.permute.xlu1 %v508_v15  ;;  %492 = vset.pattern.permute.xlu0 %v513_v20 }
  0x3e   :  { %76 = vperm.xlu1 %479, %v536_v4   ;;  %114 = vperm.xlu0 %492, %v541_v7  }
  0x42   :  { %481 = vset.pattern.permute.xlu1 %v507_v14  ;;  %495 = vset.pattern.permute.xlu0 %v514_v21 }
  0x43   :  { %204 = vperm.xlu1 %481, %v550_v12   ;;  %246 = vperm.xlu0 %495, %v536_v4  }
  0x47   :  { %482 = vset.pattern.permute.xlu1 %v508_v15  ;;  %498 = vset.pattern.permute.xlu0 %v515_v22 }
  0x48   :  { %85 = vperm.xlu1 %482, %v550_v12   ;;  %131 = vperm.xlu0 %498, %v541_v7  }
  0x4c   :  { %484 = vset.pattern.permute.xlu1 %v510_v17  ;;  %501 = vset.pattern.permute.xlu0 %v514_v21 }
  0x4d   :  { %216 = vperm.xlu1 %484, %v541_v7  }
  0x51   :  { %485 = vset.pattern.permute.xlu1 %v511_v18 }
  0x52   :  { %93 = vperm.xlu1 %485, %v536_v4  }
  0x56   :  { %487 = vset.pattern.permute.xlu1 %v510_v17 }
  0x57   :  { %221 = vperm.xlu1 %487, %v550_v12  }
  0x5b   :  { %488 = vset.pattern.permute.xlu1 %v511_v18 }
  0x5c   :  { %102 = vperm.xlu1 %488, %v550_v12  }
  0x60   :  { %490 = vset.pattern.permute.xlu1 %v512_v19 }
  0x61   :  { %233 = vperm.xlu1 %490, %v541_v7  }
  0x65   :  { %491 = vset.pattern.permute.xlu1 %v513_v20 }
  0x66   :  { %110 = vperm.xlu1 %491, %v536_v4  }
  0x6a   :  { %493 = vset.pattern.permute.xlu1 %v512_v19 }
  0x6b   :  { %238 = vperm.xlu1 %493, %v550_v12  }
  0x6f   :  { %494 = vset.pattern.permute.xlu1 %v513_v20 }
  0x70   :  { %119 = vperm.xlu1 %494, %v550_v12  }
  0x74   :  { %496 = vset.pattern.permute.xlu1 %v514_v21 }
  0x75   :  { %250 = vperm.xlu1 %496, %v541_v7   ;;  %v276_v7 = vld [vmem:[%s769_s1 + $0x70] sm:$0xff] }
  0x76   :  { %v448_v10 = vpack.c.bf16 %v277_v8, %v276_v7 }
  0x78   :  { %449 = vmatpush3.bf16.msra.mxu0 %v448_v10 }
  0x79   :  { %497 = vset.pattern.permute.xlu1 %v515_v22 }
  0x7a   :  { %127 = vperm.xlu1 %497, %v536_v4  }
  0x7e   :  { %499 = vset.pattern.permute.xlu1 %v514_v21  ;;  %v516_v21 = vmov 0.0  }
  0x7f   :  { %255 = vperm.xlu1 %499, %v550_v12  }
  0x83   :  { %500 = vset.pattern.permute.xlu1 %v515_v22 }
  0x84   :  { %136 = vperm.xlu1 %500, %v550_v12   ;;  %v162_v4 = vpop.permute.xlu1 %161  ;;  %v145_v5 = vpop.permute.xlu0 %144 }
  0x85   :  { %vm163_vm2 = vcmp.eq.s32.totalorder %v689_v9, %v162_v4  ;;  %vm146_vm5 = vcmp.eq.s32.totalorder %v689_v9, %v145_v5 }
  0x88   :  { %v166_v11 = vpop.permute.xlu1 %165  ;;  %v149_v12 = vpop.permute.xlu0 %148 }
  0x89   :  { %vm167_vm3 = vcmp.eq.s32.totalorder %v689_v9, %v166_v11  ;;  %vm150_vm6 = vcmp.eq.s32.totalorder %v689_v9, %v149_v12 }
  0x8a   :  { %vm693_vm4 = vmor %vm163_vm2, %vm167_vm3 }
  0x8b   :  { %vm151_vm7 = vmor %vm146_vm5, %vm150_vm6 }
  0x8d   :  { %v30_v14 = vpop.permute.xlu1 %29  ;;  %v47_v15 = vpop.permute.xlu0 %46 }
  0x8e   :  { %vm31_vm12 = vcmp.eq.s32.totalorder %v689_v9, %v30_v14  ;;  %vm48_vm15 = vcmp.eq.s32.totalorder %v689_v9, %v47_v15 }
  0x92   :  { %v43_v16 = vpop.permute.xlu1 %42  ;;  %v26_v17 = vpop.permute.xlu0 %25 }
  0x93   :  { %vm27_vm10 = vcmp.eq.s32.totalorder %v689_v9, %v26_v17  ;;  %vm44_vm0 = vcmp.eq.s32.totalorder %v689_v9, %v43_v16 }
  0x94   :  { %vm32_vm1 = vmor %vm27_vm10, %vm31_vm12 }
  0x95   :  { %vm49_vm3 = vmor %vm44_vm0, %vm48_vm15 }
  0x96   :  { %v35_v19 = vpop.permute.xlu0 %34 }
  0x97   :  { %v154_v18 = vpop.permute.xlu1 %153  ;;  %vm36_vm13 = vcmp.eq.s32.totalorder %v689_v9, %v35_v19 }
  0x98   :  { %vm155_vm8 = vcmp.eq.s32.totalorder %v689_v9, %v154_v18  ;;  %vm37_vm2 = vmor %vm32_vm1, %vm36_vm13 }
  0x99   :  { %vm156_vm9 = vmor %vm151_vm7, %vm155_vm8  ;;  %v369_v26 = vsel %vm37_vm2, 1.0, %v516_v21 }
  0x9a   :  { %v376_v22 = vsel %vm156_vm9, 1.0, %v516_v21 }
  0x9b   :  { %v183_v40 = vpop.permute.xlu0 %182 }
  0x9c   :  { %v171_v20 = vpop.permute.xlu1 %170 }
  0x9d   :  { %vm172_vm11 = vcmp.eq.s32.totalorder %v689_v9, %v171_v20 }
  0x9e   :  { %vm173_vm14 = vmor %vm693_vm4, %vm172_vm11  ;;  %vm184_vm11 = vcmp.eq.s32.totalorder %v689_v9, %v183_v40 }
  0x9f   :  { %v377_v23 = vsel %vm173_vm14, 1.0, %v516_v21  ;;  %v188_v42 = vpop.permute.xlu0 %187 }
  0xa0   :  { %v710_v24 = vadd.f32 %v377_v23, %v376_v22  ;;  %vm189_vm14 = vcmp.eq.s32.totalorder %v689_v9, %v188_v42 }
  0xa1   :  { %v52_v25 = vpop.permute.xlu1 %51 }
  0xa2   :  { %vm53_vm5 = vcmp.eq.s32.totalorder %v689_v9, %v52_v25 }
  0xa3   :  { %vm54_vm6 = vmor %vm49_vm3, %vm53_vm5 }
  0xa4   :  { %v370_v27 = vsel %vm54_vm6, 1.0, %v516_v21  ;;  %v196_v44 = vpop.permute.xlu0 %195 }
  0xa5   :  { %v57_v28 = vadd.f32 %v370_v27, %v369_v26  ;;  %vm197_vm0 = vcmp.eq.s32.totalorder %v689_v9, %v196_v44 }
  0xa6   :  { %v179_v29 = vpop.permute.xlu1 %178 }
  0xa7   :  { %vm180_vm12 = vcmp.eq.s32.totalorder %v689_v9, %v179_v29 }
  0xa8   :  { %vm185_vm13 = vmor %vm180_vm12, %vm184_vm11 }
  0xa9   :  { %v81_v46 = vpop.permute.xlu0 %80  ;;  %vm190_vm3 = vmor %vm185_vm13, %vm189_vm14 }
  0xaa   :  { %vm82_vm2 = vcmp.eq.s32.totalorder %v689_v9, %v81_v46  ;;  %v378_v57 = vsel %vm190_vm3, 1.0, %v516_v21 }
  0xab   :  { %v60_v30 = vpop.permute.xlu1 %59  ;;  %v193_v61 = vadd.f32 %v378_v57, %v710_v24 }
  0xac   :  { %vm61_vm7 = vcmp.eq.s32.totalorder %v689_v9, %v60_v30 }
  0xae   :  { %v213_v48 = vpop.permute.xlu0 %212 }
  0xaf   :  { %v64_v31 = vpop.permute.xlu1 %63 }
  0xb0   :  { %vm65_vm4 = vcmp.eq.s32.totalorder %v689_v9, %v64_v31 }
  0xb1   :  { %vm66_vm8 = vmor %vm61_vm7, %vm65_vm4 }
  0xb3   :  { %v69_v32 = vpop.permute.xlu1 %68  ;;  %v98_v50 = vpop.permute.xlu0 %97 }
  0xb4   :  { %vm70_vm9 = vcmp.eq.s32.totalorder %v689_v9, %v69_v32 }
  0xb5   :  { %vm71_vm10 = vmor %vm66_vm8, %vm70_vm9  ;;  %vm214_vm9 = vcmp.eq.s32.totalorder %v689_v9, %v213_v48 }
  0xb6   :  { %v371_v33 = vsel %vm71_vm10, 1.0, %v516_v21 }
  0xb7   :  { %v719_v34 = vadd.f32 %v371_v33, %v57_v28 }
  0xb8   :  { %v200_v35 = vpop.permute.xlu1 %199  ;;  %v230_v52 = vpop.permute.xlu0 %229 }
  0xb9   :  { %vm201_vm15 = vcmp.eq.s32.totalorder %v689_v9, %v200_v35  ;;  %vm231_vm14 = vcmp.eq.s32.totalorder %v689_v9, %v230_v52 }
  0xba   :  { %vm202_vm6 = vmor %vm197_vm0, %vm201_vm15 }
  0xbd   :  { %v77_v36 = vpop.permute.xlu1 %76  ;;  %v115_v54 = vpop.permute.xlu0 %114 }
  0xbe   :  { %vm78_vm1 = vcmp.eq.s32.totalorder %v689_v9, %v77_v36  ;;  %vm116_vm3 = vcmp.eq.s32.totalorder %v689_v9, %v115_v54 }
  0xbf   :  { %vm83_vm7 = vmor %vm78_vm1, %vm82_vm2  ;;  %vm99_vm2 = vcmp.eq.s32.totalorder %v689_v9, %v98_v50 }
  0xc2   :  { %v205_v37 = vpop.permute.xlu1 %204  ;;  %v247_v58 = vpop.permute.xlu0 %246 }
  0xc3   :  { %vm206_vm5 = vcmp.eq.s32.totalorder %v689_v9, %v205_v37 }
  0xc4   :  { %vm207_vm10 = vmor %vm202_vm6, %vm206_vm5 }
  0xc5   :  { %v379_v59 = vsel %vm207_vm10, 1.0, %v516_v21 }
  0xc6   :  { %v210_v63 = vadd.f32 %v379_v59, %v193_v61 }
  0xc7   :  { %v86_v38 = vpop.permute.xlu1 %85  ;;  %v132_v3 = vpop.permute.xlu0 %131 }
  0xc8   :  { %vm87_vm4 = vcmp.eq.s32.totalorder %v689_v9, %v86_v38 }
  0xc9   :  { %vm733_vm12 = vmor %vm83_vm7, %vm87_vm4 }
  0xca   :  { %v774_v56 = vsel %vm733_vm12, 4294967295, %v773_v56 }
  0xcc   :  { %v217_v39 = vpop.permute.xlu1 %216 }
  0xcd   :  { %vm218_vm8 = vcmp.eq.s32.totalorder %v689_v9, %v217_v39 }
  0xce   :  { %vm219_vm15 = vmor %vm214_vm9, %vm218_vm8 }
  0xd1   :  { %v94_v41 = vpop.permute.xlu1 %93 }
  0xd2   :  { %vm95_vm1 = vcmp.eq.s32.totalorder %v689_v9, %v94_v41 }
  0xd3   :  { %vm100_vm9 = vmor %vm95_vm1, %vm99_vm2 }
  0xd6   :  { %v222_v43 = vpop.permute.xlu1 %221 }
  0xd7   :  { %vm223_vm11 = vcmp.eq.s32.totalorder %v689_v9, %v222_v43 }
  0xd8   :  { %vm224_vm5 = vmor %vm219_vm15, %vm223_vm11  ;;  %vm248_vm15 = vcmp.eq.s32.totalorder %v689_v9, %v247_v58 }
  0xd9   :  { %v380_v62 = vsel %vm224_vm5, 1.0, %v516_v21 }
  0xda   :  { %v227_v2 = vadd.f32 %v380_v62, %v210_v63 }
  0xdb   :  { %v103_v45 = vpop.permute.xlu1 %102 }
  0xdc   :  { %vm104_vm6 = vcmp.eq.s32.totalorder %v689_v9, %v103_v45 }
  0xdd   :  { %vm105_vm11 = vmor %vm100_vm9, %vm104_vm6 }
  0xde   :  { %v373_v5 = vsel %vm105_vm11, 1.0, %v516_v21 }
  0xe0   :  { %v234_v47 = vpop.permute.xlu1 %233 }
  0xe1   :  { %vm235_vm13 = vcmp.eq.s32.totalorder %v689_v9, %v234_v47 }
  0xe2   :  { %vm236_vm4 = vmor %vm231_vm14, %vm235_vm13  ;;  %vm775_vm14 = vnez %v774_v56 }
  0xe3   :  { %v372_v1 = vsel %vm775_vm14, 1.0, %v516_v21 }
  0xe4   :  { %v91_v7 = vadd.f32 %v372_v1, %v719_v34 }
  0xe5   :  { %v111_v49 = vpop.permute.xlu1 %110 }
  0xe6   :  { %vm112_vm7 = vcmp.eq.s32.totalorder %v689_v9, %v111_v49  ;;  %v108_v12 = vadd.f32 %v373_v5, %v91_v7 }
  0xe7   :  { %vm117_vm13 = vmor %vm112_vm7, %vm116_vm3 }
  0xea   :  { %v239_v51 = vpop.permute.xlu1 %238 }
  0xeb   :  { %vm240_vm0 = vcmp.eq.s32.totalorder %v689_v9, %v239_v51 }
  0xec   :  { %vm241_vm8 = vmor %vm236_vm4, %vm240_vm0  ;;  %vm133_vm4 = vcmp.eq.s32.totalorder %v689_v9, %v132_v3 }
  0xed   :  { %v381_v0 = vsel %vm241_vm8, 1.0, %v516_v21 }
  0xee   :  { %v244_v6 = vadd.f32 %v381_v0, %v227_v2 }
  0xef   :  { %v120_v53 = vpop.permute.xlu1 %119 }
  0xf0   :  { %vm121_vm12 = vcmp.eq.s32.totalorder %v689_v9, %v120_v53 }
  0xf1   :  { %vm122_vm0 = vmor %vm117_vm13, %vm121_vm12 }
  0xf2   :  { %v374_v10 = vsel %vm122_vm0, 1.0, %v516_v21 }
  0xf3   :  { %v125_v14 = vadd.f32 %v374_v10, %v108_v12 }
  0xf4   :  { %v251_v55 = vpop.permute.xlu1 %250 }
  0xf5   :  { %vm252_vm10 = vcmp.eq.s32.totalorder %v689_v9, %v251_v55 }
  0xf6   :  { %vm253_vm1 = vmor %vm248_vm15, %vm252_vm10 }
  0xf9   :  { %v128_v60 = vpop.permute.xlu1 %127 }
  0xfa   :  { %vm129_vm6 = vcmp.eq.s32.totalorder %v689_v9, %v128_v60 }
  0xfb   :  { %vm134_vm12 = vmor %vm129_vm6, %vm133_vm4 }
  0xfe   :  { %v256_v4 = vpop.permute.xlu1 %255 }
  0xff   :  { %vm257_vm2 = vcmp.eq.s32.totalorder %v689_v9, %v256_v4 }
 0x100   :  { %vm258_vm5 = vmor %vm253_vm1, %vm257_vm2 }
 0x101   :  { %v382_v8 = vsel %vm258_vm5, 1.0, %v516_v21 }
 0x102   :  { %v261_v11 = vadd.f32 %v382_v8, %v244_v6 }
 0x103   :  { %v137_v13 = vpop.permute.xlu1 %136 }
 0x104   :  { %vm138_vm7 = vcmp.eq.s32.totalorder %v689_v9, %v137_v13  ;;  %358 = vmatprep.mubr.f32.mxu0 %v261_v11 }
 0x105   :  { %vm139_vm3 = vmor %vm134_vm12, %vm138_vm7 }
 0x106   :  { %v375_v15 = vsel %vm139_vm3, 1.0, %v516_v21 }
 0x107   :  { %v142_v16 = vadd.f32 %v375_v15, %v125_v14 }
 0x109   :  { %359 = vmatmul.mubr.f32.vlgmr.msra.gmra.mrb[0].mxu0 %v142_v16 }
 0x1dc   :  { %v415_v17 = vpop.f32.mrb[0].mxu0 }
 0x1dd   :  { %v416_v18 = vpop.f32.mrb[1].mxu0 }
 0x1de   :  { %v417_v19 = vadd.f32 %v416_v18, %v415_v17 }
 0x1e0   :  { %364 = vst [vmem:[%s770_s2] sm:$0xff] %v417_v19 }

</bundles_post_ra>
